<compile_context>
chip_gen: v7x
topology: tpu7x:2x2x1
jax: 0.10.0
libtpu: 0.0.40
codegen_flags: <defaults>
</compile_context>

<pallas_src>
import functools
import math

import jax
import jax.numpy as jnp
from jax.experimental import pallas as pl
from jax.experimental.pallas import tpu as pltpu


# ----------------------------------------------------------------------------
# Kernels
# ----------------------------------------------------------------------------
def _droppath_block_kernel(*refs, has_residual):
    """Multi-sample tile: (tb, tf) block of x, (tb, 1) per-row scale."""
    if has_residual:
        x_ref, r_ref, s_ref, o_ref = refs
    else:
        x_ref, s_ref, o_ref = refs
        r_ref = None
    y = x_ref[...].astype(jnp.float32) * s_ref[...]          # (tb,tf)*(tb,1)
    if has_residual:
        y = y + r_ref[...].astype(jnp.float32)
    o_ref[...] = y.astype(o_ref.dtype)


def _droppath_sample_kernel(*refs, has_residual, inv_keep):
    """Per-sample tile: (1, 1, tf). keep flag comes from SMEM scalar prefetch."""
    if has_residual:
        keep_ref, x_ref, r_ref, o_ref = refs
    else:
        keep_ref, x_ref, o_ref = refs
        r_ref = None
    b = pl.program_id(0)
    kept = keep_ref[b] != 0

    @pl.when(kept)
    def _():
        y = x_ref[...].astype(jnp.float32) * jnp.float32(inv_keep)
        if has_residual:
            y = y + r_ref[...].astype(jnp.float32)
        o_ref[...] = y.astype(o_ref.dtype)

    @pl.when(jnp.logical_not(kept))
    def _():
        # Dropped sample: never read x (its HBM fetch was elided via index_map).
        if has_residual:
            o_ref[...] = r_ref[...]
        else:
            o_ref[...] = jnp.zeros_like(o_ref)


# ----------------------------------------------------------------------------
# Tiling helpers
# ----------------------------------------------------------------------------
_LANE = 128


def _pick_tiles(B, F, itemsize, target_bytes):
    """Pick (tb, tf): x block ~target_bytes, (8,128)-legal, dtype-aware sublanes."""
    sub = max(8, 32 // itemsize)          # 8 (f32), 16 (bf16), 32 (int8/fp8)
    total = B * F * itemsize
    # Keep at least ~4 grid steps so both v7x TensorCores stream and the
    # pipeline actually double-buffers; cap blocks at target_bytes.
    eff_target = max(32 << 10, min(target_bytes, max(total // 8, 1)))
    if B <= sub:
        tb = B                            # block dim == full array dim -> legal
    else:
        rows_fit = max(sub, ((eff_target // max(F * itemsize, 1)) // sub) * sub)
        tb = min(rows_fit, (B // sub) * sub)
    tf_cap = max(_LANE, ((eff_target // max(tb * itemsize, 1)) // _LANE) * _LANE)
    tf = F if F <= tf_cap else tf_cap
    return tb, tf


# ----------------------------------------------------------------------------
# Pallas paths
# ----------------------------------------------------------------------------
def _drop_path_blocked(x2, keep_mask, keep, residual2, target_bytes):
    """Multi-sample blocks: amortizes per-step overhead when F is small."""
    B, F = x2.shape
    itemsize = jnp.dtype(x2.dtype).itemsize
    has_res = residual2 is not None

    scale = jnp.where(keep_mask, jnp.float32(1.0 / keep), jnp.float32(0.0))
    scale2 = scale.reshape(B, 1)

    tb, tf = _pick_tiles(B, F, itemsize, target_bytes)
    grid = (pl.cdiv(B, tb), pl.cdiv(F, tf))

    x_spec = pl.BlockSpec((tb, tf), lambda bi, fi: (bi, fi))
    s_spec = pl.BlockSpec((tb, 1), lambda bi, fi: (bi, 0))
    in_specs = [x_spec] + ([x_spec] if has_res else []) + [s_spec]
    operands = [x2] + ([residual2] if has_res else []) + [scale2]

    n_arrays = 3 if has_res else 2
    cost = pl.CostEstimate(
        flops=(2 if has_res else 1) * B * F,
        transcendentals=0,
        bytes_accessed=n_arrays * B * F * itemsize + 4 * B,
    )

    out2 = pl.pallas_call(
        functools.partial(_droppath_block_kernel, has_residual=has_res),
        out_shape=jax.ShapeDtypeStruct((B, F), x2.dtype),
        grid=grid,
        in_specs=in_specs,
        out_specs=pl.BlockSpec((tb, tf), lambda bi, fi: (bi, fi)),
        compiler_params=pltpu.CompilerParams(
            dimension_semantics=("parallel", "parallel"),
            vmem_limit_bytes=32 << 20,
        ),
        cost_estimate=cost,
    )(*operands)
    return out2


def _drop_path_per_sample(x2, keep_mask, keep, residual2, target_bytes):
    """One sample per block + scalar-prefetched keep flags -> skip HBM reads
    of dropped samples (their index_map collapses to block (0,0,0), which the
    pipeline elides on repeated steps)."""
    B, F = x2.shape
    itemsize = jnp.dtype(x2.dtype).itemsize
    has_res = residual2 is not None

    keep_i32 = keep_mask.astype(jnp.int32)                    # (B,) SMEM prefetch
    x3 = x2.reshape(B, 1, F)
    r3 = residual2.reshape(B, 1, F) if has_res else None

    tf_cap = max(_LANE, ((target_bytes // itemsize) // _LANE) * _LANE)
    tf = F if F <= tf_cap else tf_cap
    nf = pl.cdiv(F, tf)

    def x_map(b, f, keep_ref):
        k = keep_ref[b]                   # 1 -> own block, 0 -> constant (0,0,0)
        return (b * k, 0, f * k)

    def io_map(b, f, keep_ref):
        return (b, 0, f)

    in_specs = [pl.BlockSpec((1, 1, tf), x_map)]
    if has_res:
        in_specs.append(pl.BlockSpec((1, 1, tf), io_map))

    grid_spec = pltpu.PrefetchScalarGridSpec(
        num_scalar_prefetch=1,
        grid=(B, nf),
        in_specs=in_specs,
        out_specs=pl.BlockSpec((1, 1, tf), io_map),
    )

    n_arrays = 3 if has_res else 2
    cost = pl.CostEstimate(
        flops=(2 if has_res else 1) * B * F,
        transcendentals=0,
        bytes_accessed=n_arrays * B * F * itemsize + 4 * B,
    )

    operands = (keep_i32,) + ((x3, r3) if has_res else (x3,))
    out3 = pl.pallas_call(
        functools.partial(
            _droppath_sample_kernel, has_residual=has_res, inv_keep=1.0 / keep
        ),
        out_shape=jax.ShapeDtypeStruct((B, 1, F), x2.dtype),
        grid_spec=grid_spec,
        compiler_params=pltpu.CompilerParams(
            dimension_semantics=("parallel", "arbitrary"),
            vmem_limit_bytes=32 << 20,
        ),
        cost_estimate=cost,
    )(*operands)
    return out3.reshape(B, F)


# ----------------------------------------------------------------------------
# Public API
# ----------------------------------------------------------------------------
def drop_path(x, p, key, *, training=True, residual=None, target_bytes=4 << 20):
    """DropPath forward. If `residual` is given, returns residual + droppath(x)
    fused in the same memory pass."""
    if residual is not None:
        assert residual.shape == x.shape and residual.dtype == x.dtype

    if p == 0.0 or not training:
        return x if residual is None else x + residual

    keep = 1.0 - float(p)
    if keep <= 0.0:                        # p == 1: everything dropped
        z = jnp.zeros_like(x)
        return z if residual is None else residual

    B = x.shape[0]
    F = int(math.prod(x.shape[1:]))
    itemsize = jnp.dtype(x.dtype).itemsize

    # Per-sample Bernoulli(keep) draws (matches torch's bernoulli_(keep)).
    u = jax.random.uniform(key, (B,), dtype=jnp.float32)
    keep_mask = u < keep

    lane_ok = (F >= _LANE) and (F % _LANE == 0)
    big_enough = B * F * itemsize >= (64 << 10)
    if not (lane_ok and big_enough):
        # TODO(synk): for lane-sparse feature dims (F % 128 != 0) a transposed
        # layout with B on the lane axis would keep stores lane-dense; these
        # small/ragged cases just use plain jnp (XLA fuses them for free).
        bshape = (B,) + (1,) * (x.ndim - 1)
        scale = jnp.where(keep_mask, jnp.float32(1.0 / keep), jnp.float32(0.0))
        y = (x.astype(jnp.float32) * scale.reshape(bshape)).astype(x.dtype)
        return y if residual is None else y + residual

    x2 = x.reshape(B, F)
    r2 = residual.reshape(B, F) if residual is not None else None

    if F * itemsize >= (128 << 10):
        out2 = _drop_path_per_sample(x2, keep_mask, keep, r2, target_bytes)
    else:
        out2 = _drop_path_blocked(x2, keep_mask, keep, r2, target_bytes)
    return out2.reshape(x.shape)


class DropPath:
    """Mirror of the PyTorch module (no parameters)."""

    def __init__(self, p=0.0):
        self.p = p
        self.training = True

    def __call__(self, x, key, residual=None):
        return drop_path(x, self.p, key, training=self.training, residual=residual)


# ----------------------------------------------------------------------------
# Self-test
# ----------------------------------------------------------------------------
def _check_droppath(y, x, keep, residual=None):
    y = jax.device_get(y)
    x = jax.device_get(x)
    r = jax.device_get(residual) if residual is not None else None
    for b in range(x.shape[0]):
        base = r[b] if r is not None else 0.0
        kept_ok = bool(jnp.allclose(y[b], base + x[b] / keep, atol=1e-4, rtol=1e-4))
        drop_ok = bool(jnp.allclose(y[b], base + 0.0 * x[b], atol=1e-6))
        assert kept_ok or drop_ok, f"sample {b}: not a per-sample keep/drop of input"


if __name__ == "__main__":
    root = jax.random.PRNGKey(0)
    k_d1, k_d2, k_r, k_m1, k_m2 = jax.random.split(root, 5)
    p = 0.2
    keep = 1.0 - p
    mod = DropPath(p=p)

    # 1) Module-consistent tiny NCHW input (lane/size guard -> fused jnp path).
    x_small = jax.random.normal(k_d1, (2, 4, 16, 16), dtype=jnp.float32)
    y_small = jax.block_until_ready(mod(x_small, k_m1))
    _check_droppath(y_small, x_small, keep)

    # 2) Blocked multi-sample Pallas path (small per-sample feature count).
    x_blk = jax.random.normal(k_d1, (16, 8, 16, 16), dtype=jnp.float32)
    y_blk = jax.block_until_ready(mod(x_blk, k_m1))
    _check_droppath(y_blk, x_blk, keep)

    # 3) Per-sample (read-skip, scalar-prefetch) Pallas path.
    x_ps = jax.random.normal(k_d2, (4, 8, 64, 128), dtype=jnp.float32)
    y_ps = jax.block_until_ready(mod(x_ps, k_m2))
    _check_droppath(y_ps, x_ps, keep)

    # 4) Fused residual-add variant (same kernel pass).
    res = jax.random.normal(k_r, x_ps.shape, dtype=jnp.float32)
    y_fused = jax.block_until_ready(mod(x_ps, k_m2, residual=res))
    _check_droppath(y_fused, x_ps, keep, residual=res)

    # 5) Eval mode must be identity.
    mod.training = False
    y_eval = jax.block_until_ready(mod(x_ps, k_m2))
    assert bool(jnp.allclose(jax.device_get(y_eval), jax.device_get(x_ps)))

    print("KERNEL_OK")
</pallas_src>

<mosaic_0001>
module attributes {stable_mosaic.version = 11 : i64} {
  func.func @_droppath_block_kernel(%arg0: i32, %arg1: i32, %arg2: memref<8x1024xf32, #tpu.memory_space<vmem>>, %arg3: memref<8x1xf32, #tpu.memory_space<vmem>>, %arg4: memref<8x1024xf32, #tpu.memory_space<vmem>>) attributes {dimension_semantics = [#tpu.dimension_semantics<parallel>, #tpu.dimension_semantics<parallel>], iteration_bounds = array<i64: 2, 2>, scalar_prefetch = 0 : i64, scratch_operands = 0 : i64, tpu.core_type = #tpu.core_type<tc>, window_params = [{transform_indices = @transform_0, window_bounds = array<i64: 8, 1024>}, {transform_indices = @transform_1, window_bounds = array<i64: 8, 1>}, {transform_indices = @transform_2, window_bounds = array<i64: 8, 1024>}]} {
    %c0 = arith.constant 0 : index
    %c0_0 = arith.constant 0 : index
    %0 = vector.load %arg2[%c0, %c0_0] : memref<8x1024xf32, #tpu.memory_space<vmem>>, vector<8x1024xf32>
    %c0_1 = arith.constant 0 : index
    %c0_2 = arith.constant 0 : index
    %1 = vector.load %arg3[%c0_1, %c0_2] : memref<8x1xf32, #tpu.memory_space<vmem>>, vector<8x1xf32>
    %2 = vector.broadcast %1 : vector<8x1xf32> to vector<8x1024xf32>
    %3 = arith.mulf %0, %2 : vector<8x1024xf32>
    %c0_3 = arith.constant 0 : index
    %c0_4 = arith.constant 0 : index
    %4 = vector.load %arg4[%c0_3, %c0_4] : memref<8x1024xf32, #tpu.memory_space<vmem>>, vector<8x1024xf32>
    tpu.vector_store %arg4[%c0_3, %c0_4], %3 {strides = array<i32>} : memref<8x1024xf32, #tpu.memory_space<vmem>>, vector<8x1024xf32>,
    return
  }
  func.func @transform_0(%arg0: i32, %arg1: i32) -> (i32, i32) {
    %c0_i32 = arith.constant 0 : i32
    return %arg0, %arg1 : i32, i32
  }
  func.func @transform_1(%arg0: i32, %arg1: i32) -> (i32, i32) {
    %c0_i32 = arith.constant 0 : i32
    %c0_i32_0 = arith.constant 0 : i32
    return %arg0, %c0_i32 : i32, i32
  }
  func.func @transform_2(%arg0: i32, %arg1: i32) -> (i32, i32) {
    %c0_i32 = arith.constant 0 : i32
    return %arg0, %arg1 : i32, i32
  }
}

</mosaic_0001>

<bundles_post_ra>
// kernel: tpu_custom_call.1
= control target key start
LH: loop header
LB: loop body
LE: loop exit
PB: predicated region body
PF: predicated region fallthrough
CT: control target
= control target key end

     0   :  { %7 = vsyncpa [#allocation3], 0  ;;  %s788_s0 = inlined_call_operand.hbm [shape: f32[16,2048], index: 0, kind: input, shape index: {}]   ;;  %s789_s1 = inlined_call_operand.vmem [shape: f32[16,1], index: 1, kind: input, shape index: {}]   ;;  %s790_s2 = inlined_call_operand.hbm [shape: f32[16,2048], index: 2, kind: output, shape index: {}]  }
   0x1   :  { %9 = vsyncpa [#allocation3 + $0x1], 0 }
   0x2   :  { %10 = vsyncpa [#allocation4], 0 }
   0x3   :  { %12 = vsyncpa [#allocation4 + $0x1], 0  ;;  %s589_s9 = smov 0   ;;  %s591_s10 = smov 0  }
   0x4   :  { %s593_s11 = smov 0   ;;  %s595_s12 = smov 0  }
   0x5   :  { %s597_s13 = smov 0   ;;  %s599_s14 = smov 0  }
   0x6   :  { %s601_s15 = smov 0   ;;  %s603_s16 = smov 0  }
   0x7 LB: > { %s343_s17 = sadd.s32 4294967295, %s569_s16   ;;  %s344_s18 = sadd.s32 4294967294, %s569_s16   ;;  %s569_s16 = sphi %s603_s16, %s18_s16   ;;  %s565_s15 = sphi %s601_s15, %s807_s15   ;;  %s561_s14 = sphi %s599_s14, %s806_s14   ;;  %s557_s13 = sphi %s597_s13, %s805_s13   ;;  %s553_s12 = sphi %s595_s12, %s804_s12   ;;  %s549_s11 = sphi %s593_s11, %s803_s11   ;;  %s545_s10 = sphi %s591_s10, %s802_s10   ;;  %s541_s9 = sphi %s589_s9, %s801_s9  }
   0x8   : > { %s27_s19 = sadd.s32 1, %s561_s14  ;;  %s30_s20 = sadd.s32 1, %s565_s15 }
   0x9   : > { %p28_p0 = scmp.ge.s32.totalorder %s27_s19, 2  ;;  %s39_s21 = sadd.s32 1, %s549_s11 }
   0xa   : > { %p46_p1 = scmp.ne.s32.totalorder %s549_s11, %s545_s10  ;;  %p47_p2 = scmp.eq.s32.totalorder %s569_s16, 0 }
   0xb   : > { %s809_s19 = smov (%p28_p0, %s27_s19), 0  ;;  %s811_s20 = smov (!%p28_p0, %s30_s20), %s565_s15 }
   0xc   : > { %s35_s22 = ssub.s32 %s561_s14, %s809_s19  ;;  %p642_p3 = por %p47_p2, %p46_p1 }
   0xd   : > { %p32_p4 = scmp.ge.s32.totalorder %s811_s20, 2  ;;  %p52_p5 = scmp.ne.s32.totalorder %s545_s10, %s541_s9 }
   0xe   : > { %p53_p6 = scmp.eq.s32.totalorder %s343_s17, 0  ;;  %p104_p7 = scmp.eq.s32.totalorder %s343_s17, 3 }
   0xf   : > { %s813_s20 = smov (%p32_p4, %s811_s20), 0  ;;  %p110_p10 = scmp.eq.s32.totalorder %s344_s18, 3 }
  0x10   : > { %p650_p8 = por %p53_p6, %p52_p5  ;;  %p654_p9 = por %p104_p7, %p46_p1 }
  0x11   : > { %s34_s26 = ssub.s32 %s565_s15, %s813_s20  ;;  %p660_p12 = por %p110_p10, %p52_p5 }
  0x12   : > { %s794_s25 = scalar_select %p654_p9, 1, 0 }
  0x13   : > { %s36_s27 = sor.u32 %s35_s22, %s34_s26  ;;  %p373_p13 = scmp.lt.s32.totalorder %s569_s16, 4 }
  0x14   : > { %p37_p11 = scmp.eq.s32.totalorder %s36_s27, 0  ;;  %s130_s29 = sand.u32 1, %s549_s11  }
  0x15   : > { %s795_s28 = scalar_select %p660_p12, 1, 0 }
  0x16   : > { %s667_s30 = scalar_select %p37_p11, %s549_s11, %s39_s21  }
  0x17   : > { %s347_s3 = sshll.u32 %s130_s29, 6  ;;  %s348_s4 = sshll.u32 %s561_s14, 3 }
  0x18   : > { %s349_s5 = sshll.u32 %s565_s15, 4  ;;  %s134_s6 = scalar_lea.vmem [#allocation2], %s347_s3 }
  0x19   : > { %s144_s7 = sshll.u32 %s134_s6, 4  ;;  %s140_s8 = sadd.s32 %s349_s5, %s348_s4  ;;  %s671_s7 = int_to_ptr.vmem [resolvable:$true] %s144_s7 }
  0x1a   : > { %s350_s17 = sshll.u32 %s140_s8, 7  ;;  %p675_p0 = pnand %p373_p13, %p642_p3 }
  0x1b   : > { %s682_s21 = scalar_lea.hbm %s788_s0, %s350_s17  ;;  %s131_s27 = scalar_lea.sflag [#allocation3], %s130_s29 }
  0x1c   : > { %s441_s3 = scalar_lea.hbm %s682_s21, 1024  ;;  %p443_p3 = pneg %p675_p0 }
  0x1d   : > { %p442_p4 = scmp.ne.s32.totalorder %s682_s21, %s441_s3  ;;  %s446_s5 = scalar_lea.hbm %s788_s0, 4096 }
  0x1e   : > { %p447_p7 = scmp.lt.u32.totalorder %s682_s21, %s788_s0  ;;  %p448_p10 = scmp.lt.u32.totalorder %s446_s5, %s441_s3 }
  0x1f   : > { %p444_p5 = pnand %p443_p3, %p442_p4  ;;  %p450_p13 = scmp.lt.u32.totalorder %s441_s3, %s682_s21 }
  0x20   : > { %p449_p11 = por %p448_p10, %p447_p7 }
  0x21   : > { %p445_p6 = pneg %p444_p5 }
  0x22   : > { %p451_p1 = por %p450_p13, %p449_p11 }
  0x24   : > { %p452_p2 = pnand %p451_p1, %p445_p6 }
  0x26   : > { %455 = shalt.err (!%p452_p2)
}
  0x27   : > { %s456_s29 = scalar_lea.vmem %s671_s7, 1024  ;;  %s571_s17 = smov [#allocation2]  }
  0x28   : > { %p457_p4 = scmp.ne.s32.totalorder %s671_s7, %s456_s29  ;;  %s461_s22 = sshll.u32 %s571_s17, 4  ;;  %s462_s22 = int_to_ptr.vmem [resolvable:$false] %s461_s22 }
  0x29   : > { %s463_s26 = scalar_lea.vmem %s462_s22, 2048  ;;  %p464_p9 = scmp.lt.s32.totalorder %s671_s7, %s462_s22 }
  0x2a   : > { %p459_p5 = pnand %p457_p4, %p443_p3  ;;  %p465_p7 = scmp.lt.s32.totalorder %s463_s26, %s456_s29 }
  0x2c   : > { %p460_p12 = pneg %p459_p5  ;;  %p466_p10 = por %p465_p7, %p464_p9 }
  0x2e   : > { %p467_p11 = pnand %p466_p10, %p460_p12 }
  0x30   : > { %470 = shalt.err (!%p467_p11)
}
  0x31   : > { %368 = dma.hbm_to_vmem [thread:$0]  (!%p675_p0), %s682_s21, 1024, %s671_s7, %s131_s27  }
  0x32   : > { %p797_p1 = scmp.lt.s32.totalorder %s569_s16, 5  ;;  %p798_p2 = scmp.ge.s32.totalorder %s569_s16, 1 }
  0x34   : > { %p157_p3 = pnand %p798_p2, %p797_p1 }
  0x35   : > { %s716_s3 = sand.u32 (!%p157_p3), 1, %s545_s10  }
  0x36   : > { %160 = sbr.rel (%p157_p3) target bundleno = 216 (0xd8), region = 28  ;;  %s352_s23 = sshll.u32 (!%p157_p3), %s716_s3, 6 }
  0x37   : > { %s163_s4 = scalar_lea.sflag (!%p157_p3), [#allocation3], %s716_s3  ;;  %s166_s5 = scalar_lea.vmem (!%p157_p3), [#allocation2], %s352_s23 }
  0x3d   : > { %532 = dma.done.wait (%p650_p8), %s163_s4, 1024  }
  0x3e   : > { %534 = vsyncadd (%p650_p8), %s163_s4, 4294966272  ;;  %p192_p9 = scmp.lt.s32.totalorder %s557_s13, 1  ;;  %v572_v0 = vmov 0   ;;  %s356_s8 = sshll.u32 %s553_s12, 3  ;;  %v197_v2 = vld [vmem:[%s166_s5] sm:$0xff]  ;;  %v198_v3 = vld [vmem:[%s166_s5 + $0x8] sm:$0xff] }
  0x3f   : > { %440 = vset.pattern.permute.xlu0 %v572_v0  ;;  %s357_s29 = sshll.u32 %s557_s13, 4  ;;  %v199_v4 = vld [vmem:[%s166_s5 + $0x10] sm:$0xff]  ;;  %v200_v5 = vld [vmem:[%s166_s5 + $0x18] sm:$0xff]  ;;  %v201_v6 = vld [vmem:[%s166_s5 + $0x20] sm:$0xff]  ;;  %s190_s22 = scalar_lea.vmem [#allocation5], %s352_s23 }
  0x40   : > { %s193_s7 = scalar_select %p192_p9, %s557_s13, 1  ;;  %v202_v7 = vld [vmem:[%s166_s5 + $0x28] sm:$0xff]  ;;  %v203_v8 = vld [vmem:[%s166_s5 + $0x30] sm:$0xff]  ;;  %v204_v9 = vld [vmem:[%s166_s5 + $0x38] sm:$0xff] }
  0x41   : > { %s240_s17 = sadd.s32 %s357_s29, %s356_s8  ;;  %s244_s26 = sshll.u32 %s190_s22, 4  ;;  %s736_s26 = int_to_ptr.vmem [resolvable:$true] %s244_s26 }
  0x42   : > { %s354_s18 = sshll.u32 %s193_s7, 3  ;;  %s358_s24 = sshll.u32 %s240_s17, 7 }
  0x43   : > { %s195_s6 = scalar_lea.vmem %s789_s1, %s354_s18  ;;  %s734_s4 = scalar_lea.hbm %s790_s2, %s358_s24 }
  0x44   : > { %v205_v1 = vld [vmem:[%s195_s6] sm:$0xff]  ;;  %s228_s23 = scalar_lea.sflag [#allocation4], %s716_s3  ;;  %s471_s5 = scalar_lea.vmem %s736_s26, 1024 }
  0x45   : > { %208 = vperm.xlu0 %440, %v205_v1   ;;  %p472_p8 = scmp.ne.s32.totalorder %s736_s26, %s471_s5  ;;  %p799_p12 = scmp.ne.s32.totalorder %s794_s25, 0 }
  0x46   : > { %s573_s7 = smov [#allocation5]  }
  0x47   : > { %p473_p0 = pnand %p472_p8, %p799_p12  ;;  %s475_s18 = sshll.u32 %s573_s7, 4  ;;  %s476_s18 = int_to_ptr.vmem [resolvable:$false] %s475_s18 }
  0x48   : > { %s477_s21 = scalar_lea.vmem %s476_s18, 2048  ;;  %p478_p13 = scmp.lt.s32.totalorder %s736_s26, %s476_s18 }
  0x49   : > { %p474_p6 = pneg %p473_p0  ;;  %p479_p4 = scmp.lt.s32.totalorder %s477_s21, %s471_s5 }
  0x4b   : > { %p480_p5 = por %p479_p4, %p478_p13 }
  0x4d   : > { %p481_p7 = pnand %p480_p5, %p474_p6 }
  0xc4   : > { %v209_v10 = vpop.permute.xlu0 %208 }
  0xc5   : > { %v211_v11 = vmul.f32 %v209_v10, %v197_v2  ;;  %v212_v12 = vmul.f32 %v209_v10, %v198_v3  ;;  %v213_v13 = vmul.f32 %v209_v10, %v199_v4  ;;  %v214_v14 = vmul.f32 %v209_v10, %v200_v5 }
  0xc6   : > { %v215_v15 = vmul.f32 %v209_v10, %v201_v6  ;;  %v216_v16 = vmul.f32 %v209_v10, %v202_v7  ;;  %v217_v17 = vmul.f32 %v209_v10, %v203_v8  ;;  %v218_v18 = vmul.f32 %v209_v10, %v204_v9 }
  0xc7   : > { %219 = vst [vmem:[%s190_s22] sm:$0xff] %v211_v11  ;;  %220 = vst [vmem:[%s190_s22 + $0x8] sm:$0xff] %v212_v12 }
  0xc8   : > { %221 = vst [vmem:[%s190_s22 + $0x10] sm:$0xff] %v213_v13  ;;  %222 = vst [vmem:[%s190_s22 + $0x18] sm:$0xff] %v214_v14 }
  0xc9   : > { %223 = vst [vmem:[%s190_s22 + $0x20] sm:$0xff] %v215_v15  ;;  %224 = vst [vmem:[%s190_s22 + $0x28] sm:$0xff] %v216_v16 }
  0xca   : > { %225 = vst [vmem:[%s190_s22 + $0x30] sm:$0xff] %v217_v17  ;;  %226 = vst [vmem:[%s190_s22 + $0x38] sm:$0xff] %v218_v18 }
  0xcb   : > { %484 = shalt.err (!%p481_p7)
}
  0xcc   : > { %s485_s3 = scalar_lea.hbm %s734_s4, 1024  ;;  %s489_s8 = scalar_lea.hbm %s790_s2, 4096 }
  0xcd   : > { %p486_p10 = scmp.ne.s32.totalorder %s734_s4, %s485_s3  ;;  %p490_p2 = scmp.lt.u32.totalorder %s734_s4, %s790_s2 }
  0xce   : > { %p491_p3 = scmp.lt.u32.totalorder %s489_s8, %s485_s3  ;;  %p493_p8 = scmp.lt.u32.totalorder %s485_s3, %s734_s4 }
  0xcf   : > { %p487_p11 = pnand %p486_p10, %p799_p12 }
  0xd0   : > { %p492_p9 = por %p491_p3, %p490_p2 }
  0xd1   : > { %p488_p1 = pneg %p487_p11 }
  0xd2   : > { %p494_p0 = por %p493_p8, %p492_p9 }
  0xd4   : > { %p495_p6 = pnand %p494_p0, %p488_p1 }
  0xd6   : > { %498 = shalt.err (!%p495_p6)
}
  0xd7   : > { %363 = dma.vmem_to_hbm [thread:$0]  (%p799_p12), %s736_s26, 1024, %s734_s4, %s228_s23  }
  0xd8 PF: > { %p374_p13 = scmp.ge.s32.totalorder %s569_s16, 2  ;;  %s256_s24 = sand.u32 1, %s541_s9  }
  0xd9   : > { %p800_p4 = scmp.ne.s32.totalorder %s795_s28, 0  ;;  %s257_s22 = scalar_lea.sflag [#allocation4], %s256_s24 }
  0xdb   : > { %p370_p5 = pnand %p374_p13, %p800_p4 }
  0xdd   : > { %536 = dma.done.wait (!%p370_p5), %s257_s22, 1024  }
  0xde   : > { %538 = vsyncadd (!%p370_p5), %s257_s22, 4294966272  ;;  %s18_s16 = sadd.s32 1, %s569_s16   ;;  %s801_s9 = smov %s545_s10 }
  0xdf   : > { %p15_p7 = scmp.ge.s32.totalorder %s18_s16, 6   ;;  %s802_s10 = smov %s549_s11 }
  0xe0   : > { %s803_s11 = smov %s667_s30  ;;  %s804_s12 = smov %s561_s14 }
  0xe1   : > { %s805_s13 = smov %s565_s15  ;;  %s806_s14 = smov %s809_s19 }
  0xe2   : > { %s807_s15 = smov %s813_s20  ;;  %17 = sbr.rel (!%p15_p7) target bundleno = 7 (0x7), region = 76 }
  0xe9   :  { %262 = vsyncpa [#allocation3], 1 }
  0xea   :  { %264 = vsyncpa [#allocation3 + $0x1], 1 }
  0xeb   :  { %265 = vsyncpa [#allocation4], 1 }
  0xec   :  { %267 = vsyncpa [#allocation4 + $0x1], 1 }

</bundles_post_ra>
